<compile_context>
chip_gen: v6e
topology: v6e:2x2x1
jax: 0.10.0
libtpu: 0.0.40
codegen_flags: <defaults>
</compile_context>

<pallas_src>
import functools

import jax
import jax.numpy as jnp
from jax import lax
from jax.experimental import pallas as pl
from jax.experimental.pallas import tpu as pltpu

HIDDEN = 30  # nn.Linear(s_dim, 30)


def anet_kernel(x_ref, w1t_ref, b1_ref, w2t_ref, b2_ref, noise_ref, out_ref):
    # x tile: (bt, s_dim), possibly bf16; upcast in-vreg (DMA already paid in bf16).
    xv = x_ref[...].astype(jnp.float32)
    # h^T = W1 @ x^T -> (hidden, bt): contract s_dim of both operands
    # (A @ B^T form; no transpose materialized, lane axis = batch).
    ht = lax.dot_general(
        w1t_ref[...], xv,
        dimension_numbers=(((1,), (1,)), ((), ())),
        preferred_element_type=jnp.float32)
    ht = jnp.maximum(ht + b1_ref[...], 0.0)           # (hidden, bt) + (hidden, 1)
    # z^T = W2 @ h^T -> (a_dim, bt)
    zt = jnp.dot(w2t_ref[...], ht, preferred_element_type=jnp.float32)
    zt = jnp.tanh(zt + b2_ref[...]) + noise_ref[...]  # noise added AFTER tanh
    # Row-wise (over a_dim = sublane axis) softmax, numerically stabilized.
    zmax = jnp.max(zt, axis=0, keepdims=True)
    e = jnp.exp(zt - zmax)
    out_ref[...] = e / jnp.sum(e, axis=0, keepdims=True)   # lane-dense store


def _pick_batch_tile(batch, b_tile):
    """Batch tile (lane axis of the output): full array for tiny batches,
    otherwise a multiple of 128 chosen so the grid has >= 2 steps (v7x
    megacore) and is capped by b_tile."""
    if batch <= 256:
        return batch                           # single block == full array dims
    half = max(128, (batch // 2 // 128) * 128)  # at least 2 grid steps
    bt = min(b_tile, half)
    return max(128, (bt // 128) * 128)


@functools.partial(jax.jit, static_argnames=("b_tile", "use_bf16"))
def anet_forward(x, w1, b1, w2, b2, noise, *, b_tile=8192, use_bf16=False):
    B, s_dim = x.shape
    hidden, a_dim = w2.shape

    in_dtype = jnp.bfloat16 if use_bf16 else jnp.float32
    xk = x.astype(in_dtype)                       # streamed input (HBM-bound term)
    w1t = w1.T                                    # (hidden, s_dim), resident
    w2t = w2.T                                    # (a_dim, hidden), resident
    b1c = b1.reshape(hidden, 1).astype(jnp.float32)
    b2c = b2.reshape(a_dim, 1).astype(jnp.float32)
    nzc = noise.reshape(a_dim, 1).astype(jnp.float32)

    bt = _pick_batch_tile(B, b_tile)
    grid = (pl.cdiv(B, bt),)

    const = lambda i: (0, 0)
    batch_rows = lambda i: (i, 0)    # x: tiled over batch (sublane axis)
    batch_cols = lambda i: (0, i)    # out: tiled over batch (lane axis)

    cost = pl.CostEstimate(
        flops=2 * B * (s_dim * hidden + hidden * a_dim),
        transcendentals=2 * B * a_dim,                 # tanh + exp
        bytes_accessed=(xk.dtype.itemsize * B * s_dim + 4 * B * a_dim
                        + 4 * (s_dim * hidden + hidden * a_dim
                               + hidden + 2 * a_dim)),
    )

    out_t = pl.pallas_call(
        anet_kernel,
        out_shape=jax.ShapeDtypeStruct((a_dim, B), jnp.float32),
        grid=grid,
        in_specs=[
            pl.BlockSpec((bt, s_dim), batch_rows),     # x tile
            pl.BlockSpec((hidden, s_dim), const),      # W1^T  (VMEM-resident)
            pl.BlockSpec((hidden, 1), const),          # b1    (VMEM-resident)
            pl.BlockSpec((a_dim, hidden), const),      # W2^T  (VMEM-resident)
            pl.BlockSpec((a_dim, 1), const),           # b2    (VMEM-resident)
            pl.BlockSpec((a_dim, 1), const),           # noise (VMEM-resident)
        ],
        out_specs=pl.BlockSpec((a_dim, bt), batch_cols),
        compiler_params=pltpu.CompilerParams(
            dimension_semantics=("parallel",),         # shard batch on v7x's 2 TCs
        ),
        cost_estimate=cost,
    )(xk, w1t, b1c, w2t, b2c, nzc)

    return out_t.T                                     # back to (B, a_dim)


def anet_reference(x, w1, b1, w2, b2, noise):
    h = jnp.maximum(x @ w1 + b1, 0.0)
    z = jnp.tanh(h @ w2 + b2) + noise
    return jax.nn.softmax(z, axis=1)


def init_params(key, s_dim, a_dim):
    # Deterministic synthetic init (mimics nn.Linear uniform fan-in init shapes,
    # pre-transposed to the x @ W + b layout).
    k1, k2, k3, k4 = jax.random.split(key, 4)
    bound1 = 1.0 / jnp.sqrt(s_dim)
    bound2 = 1.0 / jnp.sqrt(HIDDEN)
    w1 = jax.random.uniform(k1, (s_dim, HIDDEN), jnp.float32, -bound1, bound1)
    b1 = jax.random.uniform(k2, (1, HIDDEN), jnp.float32, -bound1, bound1)
    w2 = jax.random.uniform(k3, (HIDDEN, a_dim), jnp.float32, -bound2, bound2)
    b2 = jax.random.uniform(k4, (1, a_dim), jnp.float32, -bound2, bound2)
    return w1, b1, w2, b2


if __name__ == "__main__":
    key = jax.random.PRNGKey(0)
    s_dim, a_dim, batch = 16, 8, 2
    noise_scale = 0.1

    kx, kp, kn, kx2 = jax.random.split(key, 4)
    x = jax.random.normal(kx, (batch, s_dim), jnp.float32)
    w1, b1, w2, b2 = init_params(kp, s_dim, a_dim)
    # Deterministic stand-in for np.random.normal(0.0, noise_scale, (1, a_dim)).
    noise = noise_scale * jax.random.normal(kn, (1, a_dim), jnp.float32)

    # Value-comparison tolerance is set to cover TPU matmul-precision variation
    # between the in-kernel dots and XLA's default-precision reference matmuls;
    # the sum-to-1 check only depends on the in-kernel f32 divide and stays tight.
    VTOL = dict(atol=2e-3, rtol=2e-3)

    # --- small batch: single grid step, full-array blocks -------------------
    z = anet_forward(x, w1, b1, w2, b2, noise)
    jax.block_until_ready(z)
    z_ref = anet_reference(x, w1, b1, w2, b2, noise)
    assert z.shape == (batch, a_dim)
    assert jnp.allclose(jnp.sum(z, axis=1), 1.0, atol=1e-5)
    assert jnp.allclose(z, z_ref, **VTOL)

    # --- larger batch: 2-step pipelined grid (megacore split on v7x) --------
    big_b = 1024
    xb = jax.random.normal(kx2, (big_b, s_dim), jnp.float32)
    zb = anet_forward(xb, w1, b1, w2, b2, noise)
    jax.block_until_ready(zb)
    zb_ref = anet_reference(xb, w1, b1, w2, b2, noise)
    assert zb.shape == (big_b, a_dim)
    assert jnp.allclose(jnp.sum(zb, axis=1), 1.0, atol=1e-5)
    assert jnp.allclose(zb, zb_ref, **VTOL)

    # --- bf16-streamed x (halves input HBM traffic); reference gets the same
    #     bf16-rounded activations so only accumulation-order noise remains ---
    zb16 = anet_forward(xb, w1, b1, w2, b2, noise, use_bf16=True)
    jax.block_until_ready(zb16)
    xb_rounded = xb.astype(jnp.bfloat16).astype(jnp.float32)
    zb16_ref = anet_reference(xb_rounded, w1, b1, w2, b2, noise)
    assert zb16.shape == (big_b, a_dim)
    assert jnp.allclose(jnp.sum(zb16, axis=1), 1.0, atol=1e-5)
    assert jnp.allclose(zb16, zb16_ref, **VTOL)

    print("KERNEL_OK")
</pallas_src>

<mosaic_0001>
module attributes {stable_mosaic.version = 11 : i64} {
  func.func @anet_kernel(%arg0: i32, %arg1: memref<2x16xf32, #tpu.memory_space<vmem>>, %arg2: memref<30x16xf32, #tpu.memory_space<vmem>>, %arg3: memref<30x1xf32, #tpu.memory_space<vmem>>, %arg4: memref<8x30xf32, #tpu.memory_space<vmem>>, %arg5: memref<8x1xf32, #tpu.memory_space<vmem>>, %arg6: memref<8x1xf32, #tpu.memory_space<vmem>>, %arg7: memref<8x2xf32, #tpu.memory_space<vmem>>) attributes {dimension_semantics = [#tpu.dimension_semantics<parallel>], iteration_bounds = array<i64: 1>, scalar_prefetch = 0 : i64, scratch_operands = 0 : i64, tpu.core_type = #tpu.core_type<tc>, window_params = [{transform_indices = @transform_0, window_bounds = array<i64: 2, 16>}, {pipeline_mode = #tpu.pipeline_mode<synchronous>, transform_indices = @transform_1, window_bounds = array<i64: 30, 16>}, {pipeline_mode = #tpu.pipeline_mode<synchronous>, transform_indices = @transform_2, window_bounds = array<i64: 30, 1>}, {pipeline_mode = #tpu.pipeline_mode<synchronous>, transform_indices = @transform_3, window_bounds = array<i64: 8, 30>}, {pipeline_mode = #tpu.pipeline_mode<synchronous>, transform_indices = @transform_4, window_bounds = array<i64: 8, 1>}, {pipeline_mode = #tpu.pipeline_mode<synchronous>, transform_indices = @transform_5, window_bounds = array<i64: 8, 1>}, {transform_indices = @transform_6, window_bounds = array<i64: 8, 2>}]} {
    %c0 = arith.constant 0 : index
    %c0_0 = arith.constant 0 : index
    %0 = vector.load %arg1[%c0, %c0_0] : memref<2x16xf32, #tpu.memory_space<vmem>>, vector<2x16xf32>
    %c0_1 = arith.constant 0 : index
    %c0_2 = arith.constant 0 : index
    %1 = vector.load %arg2[%c0_1, %c0_2] : memref<30x16xf32, #tpu.memory_space<vmem>>, vector<30x16xf32>
    %cst = arith.constant dense<0.000000e+00> : vector<30x2xf32>
    %2 = tpu.matmul %1, %0, %cst {dimension_numbers = #tpu.dot_dimension_numbers<[1], [1], [0], [0], [0, 0, 1, 0], [], []>} : vector<30x16xf32>, vector<2x16xf32>, vector<30x2xf32> -> vector<30x2xf32>
    %c0_3 = arith.constant 0 : index
    %c0_4 = arith.constant 0 : index
    %3 = vector.load %arg3[%c0_3, %c0_4] : memref<30x1xf32, #tpu.memory_space<vmem>>, vector<30x1xf32>
    %4 = vector.broadcast %3 : vector<30x1xf32> to vector<30x2xf32>
    %5 = arith.addf %2, %4 : vector<30x2xf32>
    %cst_5 = arith.constant 0.000000e+00 : f32
    %6 = vector.broadcast %cst_5 : f32 to vector<30x2xf32>
    %7 = arith.maximumf %5, %6 : vector<30x2xf32>
    %c0_6 = arith.constant 0 : index
    %c0_7 = arith.constant 0 : index
    %8 = vector.load %arg4[%c0_6, %c0_7] : memref<8x30xf32, #tpu.memory_space<vmem>>, vector<8x30xf32>
    %cst_8 = arith.constant dense<0.000000e+00> : vector<8x2xf32>
    %9 = tpu.matmul %8, %7, %cst_8 {dimension_numbers = #tpu.dot_dimension_numbers<[1], [0], [0], [1], [0, 0, 1, 1], [], []>} : vector<8x30xf32>, vector<30x2xf32>, vector<8x2xf32> -> vector<8x2xf32>
    %c0_9 = arith.constant 0 : index
    %c0_10 = arith.constant 0 : index
    %10 = vector.load %arg5[%c0_9, %c0_10] : memref<8x1xf32, #tpu.memory_space<vmem>>, vector<8x1xf32>
    %11 = vector.broadcast %10 : vector<8x1xf32> to vector<8x2xf32>
    %12 = arith.addf %9, %11 : vector<8x2xf32>
    %13 = math.tanh %12 : vector<8x2xf32>
    %c0_11 = arith.constant 0 : index
    %c0_12 = arith.constant 0 : index
    %14 = vector.load %arg6[%c0_11, %c0_12] : memref<8x1xf32, #tpu.memory_space<vmem>>, vector<8x1xf32>
    %15 = vector.broadcast %14 : vector<8x1xf32> to vector<8x2xf32>
    %16 = arith.addf %13, %15 : vector<8x2xf32>
    %cst_13 = arith.constant dense<0xFF800000> : vector<2xf32>
    %17 = vector.multi_reduction <maximumf>, %16, %cst_13 [0] : vector<8x2xf32> to vector<2xf32>
    %18 = vector.shape_cast %17 : vector<2xf32> to vector<1x2xf32>
    %19 = vector.broadcast %18 : vector<1x2xf32> to vector<8x2xf32>
    %20 = arith.subf %16, %19 : vector<8x2xf32>
    %21 = math.exp %20 : vector<8x2xf32>
    %cst_14 = arith.constant dense<0.000000e+00> : vector<2xf32>
    %22 = vector.multi_reduction <add>, %21, %cst_14 [0] : vector<8x2xf32> to vector<2xf32>
    %23 = vector.shape_cast %22 : vector<2xf32> to vector<1x2xf32>
    %24 = vector.broadcast %23 : vector<1x2xf32> to vector<8x2xf32>
    %25 = arith.divf %21, %24 : vector<8x2xf32>
    %c0_15 = arith.constant 0 : index
    %c0_16 = arith.constant 0 : index
    %26 = vector.load %arg7[%c0_15, %c0_16] : memref<8x2xf32, #tpu.memory_space<vmem>>, vector<8x2xf32>
    tpu.vector_store %arg7[%c0_15, %c0_16], %25 {strides = array<i32>} : memref<8x2xf32, #tpu.memory_space<vmem>>, vector<8x2xf32>,
    return
  }
  func.func @transform_0(%arg0: i32) -> (i32, i32) {
    %c0_i32 = arith.constant 0 : i32
    %c0_i32_0 = arith.constant 0 : i32
    return %arg0, %c0_i32 : i32, i32
  }
  func.func @transform_1(%arg0: i32) -> (i32, i32) {
    %c0_i32 = arith.constant 0 : i32
    %c0_i32_0 = arith.constant 0 : i32
    %c0_i32_1 = arith.constant 0 : i32
    return %c0_i32, %c0_i32_0 : i32, i32
  }
  func.func @transform_2(%arg0: i32) -> (i32, i32) {
    %c0_i32 = arith.constant 0 : i32
    %c0_i32_0 = arith.constant 0 : i32
    %c0_i32_1 = arith.constant 0 : i32
    return %c0_i32, %c0_i32_0 : i32, i32
  }
  func.func @transform_3(%arg0: i32) -> (i32, i32) {
    %c0_i32 = arith.constant 0 : i32
    %c0_i32_0 = arith.constant 0 : i32
    %c0_i32_1 = arith.constant 0 : i32
    return %c0_i32, %c0_i32_0 : i32, i32
  }
  func.func @transform_4(%arg0: i32) -> (i32, i32) {
    %c0_i32 = arith.constant 0 : i32
    %c0_i32_0 = arith.constant 0 : i32
    %c0_i32_1 = arith.constant 0 : i32
    return %c0_i32, %c0_i32_0 : i32, i32
  }
  func.func @transform_5(%arg0: i32) -> (i32, i32) {
    %c0_i32 = arith.constant 0 : i32
    %c0_i32_0 = arith.constant 0 : i32
    %c0_i32_1 = arith.constant 0 : i32
    return %c0_i32, %c0_i32_0 : i32, i32
  }
  func.func @transform_6(%arg0: i32) -> (i32, i32) {
    %c0_i32 = arith.constant 0 : i32
    %c0_i32_0 = arith.constant 0 : i32
    return %c0_i32, %arg0 : i32, i32
  }
}

</mosaic_0001>

<bundles_post_ra>
// kernel: anet_forward.1
= control target key start
LH: loop header
LB: loop body
LE: loop exit
PB: predicated region body
PF: predicated region fallthrough
CT: control target
= control target key end

     0   :  { %vm52_vm0 = vcmask 130048   ;;  %v322_v2 = vmov 0   ;;  %v323_v12 = vmov 0.0   ;;  %vm324_vm1 = vmmov 0   ;;  %s408_s0 = inlined_call_operand.vmem [shape: f32[2,16], index: 0, kind: input, shape index: {}]   ;;  %s409_s1 = inlined_call_operand.vmem [shape: f32[30,16], index: 1, kind: input, shape index: {}]   ;;  %s410_s2 = inlined_call_operand.vmem [shape: f32[30,1], index: 2, kind: input, shape index: {}]   ;;  %s411_s4 = inlined_call_operand.vmem [shape: f32[8,1], index: 4, kind: input, shape index: {}]   ;;  %s412_s5 = inlined_call_operand.vmem [shape: f32[8,1], index: 5, kind: input, shape index: {}]   ;;  %s413_s3 = inlined_call_operand.vmem [shape: f32[8,30], index: 3, kind: input, shape index: {}]   ;;  %s414_s6 = inlined_call_operand.vmem [shape: f32[8,2], index: 6, kind: output, shape index: {}]  }
   0x1   :  { %v23_v0 = vld [vmem:[%s408_s0] sm:$0x3]  ;;  %314 = vset.pattern.permute.xlu0 %v322_v2  ;;  %315 = vset.pattern.permute.xlu1 %v322_v2  ;;  %v31_v3 = vld [vmem:[%s410_s2 + $0x18] sm:$0x3f]  ;;  %v25_v4 = vld [vmem:[%s409_s1 + $0x8] sm:$0xff]  ;;  %vm168_vm2 = vcmask 1045504  }
   0x2   :  { %v24_v1 = vld [vmem:[%s409_s1] sm:$0xff]  ;;  %292 = vmatprep.subr.msk.mxu0 %vm52_vm0, %v23_v0  ;;  %49 = vperm.xlu0 %314, %v31_v3   ;;  %v29_v5 = vld [vmem:[%s410_s2 + $0x8] sm:$0xff]  ;;  %v26_v6 = vld [vmem:[%s409_s1 + $0x10] sm:$0xff]  ;;  %vm164_vm3 = vcmask 244736   ;;  %vm250_vm4 = vcmask 15360  }
   0x3   :  { %294 = vmatprep.mubr.msk.f32.mxu0 %vm52_vm0, %v24_v1  ;;  %293 = vmatpush3.xpose.msk.msra.mxu0 %vm52_vm0, %v23_v0  ;;  %v30_v7 = vld [vmem:[%s410_s2 + $0x10] sm:$0xff]  ;;  %v28_v8 = vld [vmem:[%s410_s2] sm:$0xff]  ;;  %v27_v9 = vld [vmem:[%s409_s1 + $0x18] sm:$0x3f] }
   0x4   :  { %39 = vperm.xlu1 %315, %v29_v5   ;;  %v158_v10 = vld [vmem:[%s411_s4] sm:$0xff]  ;;  %300 = vmatprep.subr.mxu1 %v323_v12 }
   0x5   :  { %v243_v11 = vld [vmem:[%s412_s5] sm:$0xff]  ;;  %308 = vmatprep.mubr.msk.f32.mxu1 %vm324_vm1, %v323_v12 }
   0x6   :  { %295 = vmatmul.mubr.msk.f32.vlgmr.msra.gmra.mxu0 %vm52_vm0, %v25_v4  ;;  %44 = vperm.xlu0 %314, %v30_v7   ;;  %v157_v29 = vld [vmem:[%s413_s3] sm:$0xff] }
   0x7   :  { %297 = vmatprep.mubr.msk.f32.mxu0 %vm52_vm0, %v26_v6 }
   0x8   :  { %34 = vperm.xlu1 %315, %v28_v8  }
   0xa   :  { %298 = vmatmul.mubr.msk.f32.gmra.mxu0 %vm52_vm0, %v27_v9  ;;  %161 = vperm.xlu0 %314, %v158_v10  }
   0xc   :  { %246 = vperm.xlu1 %315, %v243_v11  }
  0x7d   :  { %v50_v13 = vpop.permute.xlu0 %49 }
  0x7f   :  { %v40_v14 = vpop.permute.xlu1 %39 }
  0x81   :  { %v45_v18 = vpop.permute.xlu0 %44 }
  0x83   :  { %v35_v20 = vpop.permute.xlu1 %34 }
  0x85   :  { %v162_v30 = vpop.permute.xlu0 %161 }
  0x87   :  { %v247_v35 = vpop.permute.xlu1 %246 }
  0xc6   :  { %v296_v15 = vpop.f32.mrf.mxu0 }
  0xc7   :  { %v140_v22 = vadd.f32 %v296_v15, %v40_v14 }
  0xc8   :  { %v134_v16 = vpop.f32.mrf.mxu0 }
  0xc9   :  { %v135_v25 = vadd.f32 %v134_v16, %v35_v20  ;;  %v154_v27 = vmax.f32 %v140_v22, 0.0 }
  0xca   :  { %v299_v17 = vpop.f32.mrf.mxu0 }
  0xcb   :  { %v150_v19 = vadd.f32 %v299_v17, %v50_v13  ;;  %v153_v28 = vmax.f32 %v135_v25, 0.0 }
  0xcc   :  { %v144_v21 = vpop.f32.mrf.mxu0 }
  0xcd   :  { %v156_v23 = vmax.f32 %v150_v19, 0.0  ;;  %v145_v24 = vadd.f32 %v144_v21, %v45_v18 }
  0xcf   :  { %v155_v26 = vmax.f32 %v145_v24, 0.0  ;;  %301 = vmatpush3.msk.msra.mxu1 %vm168_vm2, %v156_v23 }
  0xd0   :  { %302 = vmatprep.subr.mxu1 %v323_v12 }
  0xd1   :  { %303 = vmatpush3.msra.mxu1 %v155_v26 }
  0xd2   :  { %304 = vmatprep.subr.mxu1 %v323_v12 }
  0xd3   :  { %305 = vmatpush3.msra.mxu1 %v154_v27 }
  0xd4   :  { %306 = vmatprep.subr.mxu1 %v323_v12 }
  0xd5   :  { %307 = vmatpush3.msra.mxu1 %v153_v28 }
  0xd6   :  { %309 = vmatmul.mubr.msk.f32.vlgmr.msra.gmra.mxu1 %vm164_vm3, %v157_v29 }
 0x196   :  { %v238_v31 = vpop.f32.mrf.mxu1 }
 0x197   :  { %v239_v32 = vadd.f32 %v238_v31, %v162_v30 }
 0x198   :  { %v310_v33 = vpop.f32.mrf.mxu1 }
 0x199   :  { %316 = vtanh.f32 %v239_v32 }
 0x1a6   :  { %v317_v34 = vpop.eup %316 }
 0x1a7   :  { %v249_v36 = vadd.f32 %v317_v34, %v247_v35 }
 0x1a9   :  { %v251_v37 = vsel %vm250_vm4, %v249_v36, -inf }
 0x1aa   :  { %v252_v38 = vrot.slane %v251_v37, 4 }
 0x1ac   :  { %v253_v39 = vmax.f32 %v251_v37, %v252_v38 }
 0x1ae   :  { %v254_v40 = vrot.slane %v253_v39, 2 }
 0x1b0   :  { %v255_v41 = vmax.f32 %v253_v39, %v254_v40 }
 0x1b2   :  { %v256_v42 = vrot.slane %v255_v41, 1 }
 0x1b4   :  { %v257_v43 = vmax.f32 %v255_v41, %v256_v42 }
 0x1b6   :  { %v258_v44 = vsub.f32 %v249_v36, %v257_v43 }
 0x1b8   :  { %v259_v45 = vmul.f32 1.442695, %v258_v44 }
 0x1ba   :  { %318 = vpow2.f32 %v259_v45 }
 0x1c7   :  { %v319_v46 = vpop.eup %318 }
 0x1c8   :  { %v261_v47 = vsel %vm250_vm4, %v319_v46, 0.0 }
 0x1c9   :  { %v262_v48 = vrot.slane %v261_v47, 4 }
 0x1cb   :  { %v263_v49 = vadd.f32 %v262_v48, %v261_v47 }
 0x1cd   :  { %v264_v50 = vrot.slane %v263_v49, 2 }
 0x1cf   :  { %v265_v51 = vadd.f32 %v264_v50, %v263_v49 }
 0x1d1   :  { %v266_v52 = vrot.slane %v265_v51, 1 }
 0x1d3   :  { %v267_v53 = vadd.f32 %v266_v52, %v265_v51 }
 0x1d5   :  { %320 = vrcp.f32 %v267_v53 }
 0x1e2   :  { %v321_v54 = vpop.eup %320 }
 0x1e3   :  { %v269_v55 = vmul.f32 %v321_v54, %v319_v46 }
 0x1e5   :  { %270 = vst.msk [vmem:[%s414_s6] sm:$0xff] %vm250_vm4, %v269_v55 }

</bundles_post_ra>
